<compile_context>
chip_gen: v7x
topology: tpu7x:2x2x1
jax: 0.10.0
libtpu: 0.0.40
codegen_flags: <defaults>
</compile_context>

<pallas_src>
import jax
import jax.numpy as jnp
from jax.experimental import pallas as pl
from jax.experimental.pallas import tpu as pltpu  # noqa: F401  (TPU backend)

# Fixed architecture constants from the PyTorch module.
CONV_OUT = 4        # Conv1d(1, 4, kernel_size=100, stride=50)
CONV_K = 100
CONV_S = 50
FC1 = 128
FC2 = 64
NUM_TARGETS = 3


# ---------------------------------------------------------------------------
# Single fused Pallas kernel: conv-as-matmul + pool + ReLU + MLP + LogSoftmax
# ---------------------------------------------------------------------------
def fullcnn_kernel(x2_ref, wbd_ref, bc_ref,
                   w1_ref, b1_ref, w2_ref, b2_ref, w3_ref, b3_ref,
                   out_ref):
    B = out_ref.shape[0]

    # Conv1d for every pooled position of every sample in ONE matmul:
    # rows 0..B-1 hold the even pooling partners, rows B..2B-1 the odd ones.
    yab = jnp.dot(x2_ref[...], wbd_ref[...],
                  preferred_element_type=jnp.float32)          # (2B, Q*F)

    # MaxPool1d(2) (bias is shared inside a pooling pair so it commutes with
    # the max), then bias + ReLU.  Lane order of feat is (t, l, c); the
    # matching permutation was applied to w1 in the wrapper.
    feat = jnp.maximum(jnp.maximum(yab[:B, :], yab[B:, :]) + bc_ref[...], 0.0)

    # Classifier (Dropout == identity at inference).
    h1 = jnp.maximum(
        jnp.dot(feat, w1_ref[...], preferred_element_type=jnp.float32)
        + b1_ref[...], 0.0)
    h2 = jnp.maximum(
        jnp.dot(h1, w2_ref[...], preferred_element_type=jnp.float32)
        + b2_ref[...], 0.0)
    logits = (jnp.dot(h2, w3_ref[...], preferred_element_type=jnp.float32)
              + b3_ref[...])

    # LogSoftmax over the targets dimension.
    m = jnp.max(logits, axis=-1, keepdims=True)
    z = logits - m
    lse = jnp.log(jnp.sum(jnp.exp(z), axis=-1, keepdims=True))
    out_ref[...] = (z - lse).astype(out_ref.dtype)


# ---------------------------------------------------------------------------
# Wrapper: cheap XLA-side layout prep (slices / reshapes / weight packing),
# then one pallas_call for the entire forward pass.
# ---------------------------------------------------------------------------
def fullcnn_forward(x, P):
    """fullCNN forward.  x: (batch, in_channels=1, timesteps, sq_len) f32."""
    B, C_in, T, L = x.shape
    assert C_in == 1, "Conv1d(1, ...) expects a single input channel"
    F, K, S = CONV_OUT, CONV_K, CONV_S
    Lc = (L - K) // S + 1          # conv output length
    Lp = Lc // 2                   # after MaxPool1d(2) (floor -> odd Lc is ok)
    Q = T * Lp                     # pooled positions per batch element
    flat = Q * F
    assert P['w1'].shape[1] == flat, (
        "featSize / timesteps / sq_len inconsistent with Linear(flat_fts,128)")

    # Structured im2col (no gather): even conv positions have stride 2*S == K,
    # so their windows tile the signal contiguously; odd positions are the
    # same slab shifted by S.
    xr = x.reshape(B * T, L)
    pe = xr[:, :Lp * K].reshape(B, Q * K)            # even pooling partners
    po = xr[:, S:S + Lp * K].reshape(B, Q * K)       # odd pooling partners
    x2 = jnp.concatenate([pe, po], axis=0)           # (2B, Q*K): one operand

    # Conv weight as a block-diagonal matmul operand -> conv output for all
    # positions lands lane-dense in order (t, l, c).
    wc = jnp.transpose(P['w_conv'][:, 0, :])         # (K, F)
    wbd = jnp.kron(jnp.eye(Q, dtype=wc.dtype), wc)   # (Q*K, Q*F)
    bc = jnp.tile(P['b_conv'], Q).reshape(1, Q * F)

    # Fold PyTorch's channel-major flatten (t, c, l) into the first FC weight.
    w1p = (P['w1'].reshape(FC1, T, F, Lp)            # [h, t, c, l]
           .transpose(1, 3, 2, 0)                    # [t, l, c, h]
           .reshape(flat, FC1))
    b1 = P['b1'].reshape(1, FC1)
    w2t = jnp.transpose(P['w2'])                     # (FC1, FC2)
    b2 = P['b2'].reshape(1, FC2)
    w3t = jnp.transpose(P['w3'])                     # (FC2, NUM_TARGETS)
    b3 = P['b3'].reshape(1, NUM_TARGETS)

    return pl.pallas_call(
        fullcnn_kernel,
        out_shape=jax.ShapeDtypeStruct((B, NUM_TARGETS), jnp.float32),
    )(x2, wbd, bc, w1p, b1, w2t, b2, w3t, b3)


# ---------------------------------------------------------------------------
# Pure-JAX reference mirroring the PyTorch module (for verification).
# ---------------------------------------------------------------------------
def torch_reference(x, P):
    B, C, T, L = x.shape
    h = x.reshape(B * T, C, L)
    y = jax.lax.conv_general_dilated(
        h, P['w_conv'], window_strides=(CONV_S,), padding='VALID',
        dimension_numbers=('NCH', 'OIH', 'NCH'))
    y = y + P['b_conv'][None, :, None]
    y = jax.lax.reduce_window(y, -jnp.inf, jax.lax.max,
                              (1, 1, 2), (1, 1, 2), 'VALID')
    y = jnp.maximum(y, 0.0)
    feat = y.reshape(B, -1)
    h1 = jnp.maximum(feat @ P['w1'].T + P['b1'], 0.0)
    h2 = jnp.maximum(h1 @ P['w2'].T + P['b2'], 0.0)
    logits = h2 @ P['w3'].T + P['b3']
    return jax.nn.log_softmax(logits, axis=-1)


# ---------------------------------------------------------------------------
# Deterministic synthetic parameters (PyTorch weight layouts / shapes).
# ---------------------------------------------------------------------------
def init_params(key, flat_fts):
    ks = jax.random.split(key, 8)

    def u(k, shape, fan_in):
        bound = float(fan_in) ** -0.5
        return jax.random.uniform(k, shape, jnp.float32, -bound, bound)

    P = {}
    P['w_conv'] = u(ks[0], (CONV_OUT, 1, CONV_K), CONV_K)
    P['b_conv'] = u(ks[1], (CONV_OUT,), CONV_K)
    P['w1'] = u(ks[2], (FC1, flat_fts), flat_fts)
    P['b1'] = u(ks[3], (FC1,), flat_fts)
    P['w2'] = u(ks[4], (FC2, FC1), FC1)
    P['b2'] = u(ks[5], (FC2,), FC1)
    P['w3'] = u(ks[6], (NUM_TARGETS, FC2), FC2)
    P['b3'] = u(ks[7], (NUM_TARGETS,), FC2)
    return P


if __name__ == "__main__":
    # Small shapes consistent with the module: x is (batch, in_channels=1,
    # timesteps, sq_len).  The module's x.view(batch, flat_fts) requires
    # flat_fts(featSize) == timesteps * 4 * pooled_len(sq_len).
    B, C_in, T, sq_len = 2, 1, 2, 500
    featSize = 850
    Lc_feat = (featSize - CONV_K) // CONV_S + 1      # 16
    flat_fts = CONV_OUT * (Lc_feat // 2)             # 32
    Lc = (sq_len - CONV_K) // CONV_S + 1             # 9 (odd -> pool drops one)
    Lp = Lc // 2                                     # 4
    assert flat_fts == T * CONV_OUT * Lp

    key = jax.random.PRNGKey(0)
    kx, kp = jax.random.split(key)
    x = jax.random.normal(kx, (B, C_in, T, sq_len), jnp.float32)
    P = init_params(kp, flat_fts)

    fwd = jax.jit(fullcnn_forward)
    out = jax.block_until_ready(fwd(x, P))
    ref = jax.block_until_ready(torch_reference(x, P))

    assert out.shape == (B, NUM_TARGETS)
    assert bool(jnp.all(jnp.isfinite(out)))
    assert bool(jnp.allclose(out, ref, rtol=2e-2, atol=2e-2))
    # log-probabilities must exponentiate to ~1 per row
    assert bool(jnp.allclose(jnp.sum(jnp.exp(out), axis=-1), 1.0, atol=1e-3))
    print("KERNEL_OK")
</pallas_src>

<mosaic_0001>
module attributes {stable_mosaic.version = 11 : i64} {
  func.func @fullcnn_kernel(%arg0: memref<4x800xf32, #tpu.memory_space<vmem>>, %arg1: memref<800x32xf32, #tpu.memory_space<vmem>>, %arg2: memref<1x32xf32, #tpu.memory_space<vmem>>, %arg3: memref<32x128xf32, #tpu.memory_space<vmem>>, %arg4: memref<1x128xf32, #tpu.memory_space<vmem>>, %arg5: memref<128x64xf32, #tpu.memory_space<vmem>>, %arg6: memref<1x64xf32, #tpu.memory_space<vmem>>, %arg7: memref<64x3xf32, #tpu.memory_space<vmem>>, %arg8: memref<1x3xf32, #tpu.memory_space<vmem>>, %arg9: memref<2x3xf32, #tpu.memory_space<vmem>>) attributes {dimension_semantics = [], scalar_prefetch = 0 : i64, scratch_operands = 0 : i64, tpu.core_type = #tpu.core_type<tc>} {
    %c0 = arith.constant 0 : index
    %c0_0 = arith.constant 0 : index
    %0 = vector.load %arg0[%c0, %c0_0] : memref<4x800xf32, #tpu.memory_space<vmem>>, vector<4x800xf32>
    %c0_1 = arith.constant 0 : index
    %c0_2 = arith.constant 0 : index
    %1 = vector.load %arg1[%c0_1, %c0_2] : memref<800x32xf32, #tpu.memory_space<vmem>>, vector<800x32xf32>
    %cst = arith.constant dense<0.000000e+00> : vector<4x32xf32>
    %2 = tpu.matmul %0, %1, %cst {dimension_numbers = #tpu.dot_dimension_numbers<[1], [0], [0], [1], [0, 0, 1, 1], [], []>} : vector<4x800xf32>, vector<800x32xf32>, vector<4x32xf32> -> vector<4x32xf32>
    %3 = vector.extract_strided_slice %2 {offsets = [0, 0], sizes = [2, 32], strides = [1, 1]} : vector<4x32xf32> to vector<2x32xf32>
    %4 = vector.extract_strided_slice %2 {offsets = [2, 0], sizes = [2, 32], strides = [1, 1]} : vector<4x32xf32> to vector<2x32xf32>
    %5 = arith.maximumf %3, %4 : vector<2x32xf32>
    %c0_3 = arith.constant 0 : index
    %c0_4 = arith.constant 0 : index
    %6 = vector.load %arg2[%c0_3, %c0_4] : memref<1x32xf32, #tpu.memory_space<vmem>>, vector<1x32xf32>
    %7 = vector.broadcast %6 : vector<1x32xf32> to vector<2x32xf32>
    %8 = arith.addf %5, %7 : vector<2x32xf32>
    %cst_5 = arith.constant 0.000000e+00 : f32
    %9 = vector.broadcast %cst_5 : f32 to vector<2x32xf32>
    %10 = arith.maximumf %8, %9 : vector<2x32xf32>
    %c0_6 = arith.constant 0 : index
    %c0_7 = arith.constant 0 : index
    %11 = vector.load %arg3[%c0_6, %c0_7] : memref<32x128xf32, #tpu.memory_space<vmem>>, vector<32x128xf32>
    %cst_8 = arith.constant dense<0.000000e+00> : vector<2x128xf32>
    %12 = tpu.matmul %10, %11, %cst_8 {dimension_numbers = #tpu.dot_dimension_numbers<[1], [0], [0], [1], [0, 0, 1, 1], [], []>} : vector<2x32xf32>, vector<32x128xf32>, vector<2x128xf32> -> vector<2x128xf32>
    %c0_9 = arith.constant 0 : index
    %c0_10 = arith.constant 0 : index
    %13 = vector.load %arg4[%c0_9, %c0_10] : memref<1x128xf32, #tpu.memory_space<vmem>>, vector<1x128xf32>
    %14 = vector.broadcast %13 : vector<1x128xf32> to vector<2x128xf32>
    %15 = arith.addf %12, %14 : vector<2x128xf32>
    %cst_11 = arith.constant 0.000000e+00 : f32
    %16 = vector.broadcast %cst_11 : f32 to vector<2x128xf32>
    %17 = arith.maximumf %15, %16 : vector<2x128xf32>
    %c0_12 = arith.constant 0 : index
    %c0_13 = arith.constant 0 : index
    %18 = vector.load %arg5[%c0_12, %c0_13] : memref<128x64xf32, #tpu.memory_space<vmem>>, vector<128x64xf32>
    %cst_14 = arith.constant dense<0.000000e+00> : vector<2x64xf32>
    %19 = tpu.matmul %17, %18, %cst_14 {dimension_numbers = #tpu.dot_dimension_numbers<[1], [0], [0], [1], [0, 0, 1, 1], [], []>} : vector<2x128xf32>, vector<128x64xf32>, vector<2x64xf32> -> vector<2x64xf32>
    %c0_15 = arith.constant 0 : index
    %c0_16 = arith.constant 0 : index
    %20 = vector.load %arg6[%c0_15, %c0_16] : memref<1x64xf32, #tpu.memory_space<vmem>>, vector<1x64xf32>
    %21 = vector.broadcast %20 : vector<1x64xf32> to vector<2x64xf32>
    %22 = arith.addf %19, %21 : vector<2x64xf32>
    %cst_17 = arith.constant 0.000000e+00 : f32
    %23 = vector.broadcast %cst_17 : f32 to vector<2x64xf32>
    %24 = arith.maximumf %22, %23 : vector<2x64xf32>
    %c0_18 = arith.constant 0 : index
    %c0_19 = arith.constant 0 : index
    %25 = vector.load %arg7[%c0_18, %c0_19] : memref<64x3xf32, #tpu.memory_space<vmem>>, vector<64x3xf32>
    %cst_20 = arith.constant dense<0.000000e+00> : vector<2x3xf32>
    %26 = tpu.matmul %24, %25, %cst_20 {dimension_numbers = #tpu.dot_dimension_numbers<[1], [0], [0], [1], [0, 0, 1, 1], [], []>} : vector<2x64xf32>, vector<64x3xf32>, vector<2x3xf32> -> vector<2x3xf32>
    %c0_21 = arith.constant 0 : index
    %c0_22 = arith.constant 0 : index
    %27 = vector.load %arg8[%c0_21, %c0_22] : memref<1x3xf32, #tpu.memory_space<vmem>>, vector<1x3xf32>
    %28 = vector.broadcast %27 : vector<1x3xf32> to vector<2x3xf32>
    %29 = arith.addf %26, %28 : vector<2x3xf32>
    %cst_23 = arith.constant dense<0xFF800000> : vector<2xf32>
    %30 = vector.multi_reduction <maximumf>, %29, %cst_23 [1] : vector<2x3xf32> to vector<2xf32>
    %31 = vector.shape_cast %30 : vector<2xf32> to vector<2x1xf32>
    %32 = vector.broadcast %31 : vector<2x1xf32> to vector<2x3xf32>
    %33 = arith.subf %29, %32 : vector<2x3xf32>
    %34 = math.exp %33 : vector<2x3xf32>
    %cst_24 = arith.constant dense<0.000000e+00> : vector<2xf32>
    %35 = vector.multi_reduction <add>, %34, %cst_24 [1] : vector<2x3xf32> to vector<2xf32>
    %36 = vector.shape_cast %35 : vector<2xf32> to vector<2x1xf32>
    %37 = math.log %36 : vector<2x1xf32>
    %38 = vector.broadcast %37 : vector<2x1xf32> to vector<2x3xf32>
    %39 = arith.subf %33, %38 : vector<2x3xf32>
    %c0_25 = arith.constant 0 : index
    %c0_26 = arith.constant 0 : index
    %40 = vector.load %arg9[%c0_25, %c0_26] : memref<2x3xf32, #tpu.memory_space<vmem>>, vector<2x3xf32>
    tpu.vector_store %arg9[%c0_25, %c0_26], %39 {strides = array<i32>} : memref<2x3xf32, #tpu.memory_space<vmem>>, vector<2x3xf32>,
    return
  }
}

</mosaic_0001>

<bundles_post_ra>
// kernel: tile.8
= control target key start
LH: loop header
LB: loop body
LE: loop exit
PB: predicated region body
PF: predicated region fallthrough
CT: control target
= control target key end

     0   :  { %s22_s0 = inlined_call_operand.vmem [shape: f32[4], index: 0, kind: input, shape index: {}]   ;;  %s23_s1 = inlined_call_operand.vmem [shape: f32[8,4], index: 1, kind: output, shape index: {}]  }
   0x1   :  { %v4_v0 = vld [vmem:[%s22_s0] ss:$0 sm:$0xff] }
   0x2   :  { %5 = vst [vmem:[%s23_s1] sm:$0xff] %v4_v0 }

// kernel: tile.9
= control target key start
LH: loop header
LB: loop body
LE: loop exit
PB: predicated region body
PF: predicated region fallthrough
CT: control target
= control target key end

     0   :  { %s67_s10 = smov 28   ;;  %s68_s11 = smov 20   ;;  %vm3_vm0 = vcmask 31744   ;;  %vm9_vm1 = vcmask 261344   ;;  %vm15_vm2 = vcmask 228544   ;;  %vm21_vm3 = vcmask 195744   ;;  %s111_s0 = inlined_call_operand.vmem [shape: f32[8,4], index: 0, kind: input, shape index: {}]   ;;  %s112_s1 = inlined_call_operand.vmem [shape: f32[1,32], index: 1, kind: output, shape index: {}]  }
   0x1   :  { %v53_v0 = vld [vmem:[%s111_s0 + $0x7] sm:$0x1]   ;;  %v55_v1 = vld [vmem:[%s111_s0 + $0x5] sm:$0x1]   ;;  %v54_v2 = vld [vmem:[%s111_s0 + $0x6] sm:$0x1]  }
   0x2   :  { %7 = vrot.lane.b32.xlu0 %v53_v0, %s67_s10  ;;  %19 = vrot.lane.b32.xlu1 %v55_v1, %s68_s11  ;;  %v56_v3 = vld [vmem:[%s111_s0 + $0x4] sm:$0x1]   ;;  %v2_v4 = vld [vmem:[%s111_s0] sm:$0x1]   ;;  %s69_s18 = smov 24   ;;  %s70_s19 = smov 16  }
   0x3   :  { %4 = vst.msk [vmem:[#allocation0] sm:$0x1] %vm3_vm0, %v2_v4   ;;  %v57_v5 = vld [vmem:[%s111_s0 + $0x3] sm:$0x1]   ;;  %v58_v6 = vld [vmem:[%s111_s0 + $0x2] sm:$0x1]  }
   0x4   :  { %s71_s24 = smov 12   ;;  %s72_s25 = smov 8   ;;  %v59_v7 = vld [vmem:[%s111_s0 + $0x1] sm:$0x1]   ;;  %vm27_vm4 = vcmask 162944   ;;  %vm33_vm5 = vcmask 130144  }
   0x5   :  { %s73_s0 = smov 4   ;;  %vm39_vm6 = vcmask 97344   ;;  %vm45_vm7 = vcmask 64544  }
   0x6   :  { %13 = vrot.lane.b32.xlu0 %v54_v2, %s69_s18  ;;  %25 = vrot.lane.b32.xlu1 %v56_v3, %s70_s19 }
   0xa   :  { %31 = vrot.lane.b32.xlu0 %v57_v5, %s71_s24  ;;  %37 = vrot.lane.b32.xlu1 %v58_v6, %s72_s25 }
   0xe   :  { %43 = vrot.lane.b32.xlu0 %v59_v7, %s73_s0 }
  0x74   :  { %v8_v8 = vpop.permute.xlu0 %7   ;;  %v20_v9 = vpop.permute.xlu1 %19  }
  0x75   :  { %10 = vst.msk [vmem:[#allocation0] sm:$0x1] %vm9_vm1, %v8_v8  }
  0x78   :  { %v14_v10 = vpop.permute.xlu0 %13   ;;  %v26_v11 = vpop.permute.xlu1 %25  }
  0x79   :  { %16 = vst.msk [vmem:[#allocation0] sm:$0x1] %vm15_vm2, %v14_v10  }
  0x7a   :  { %22 = vst.msk [vmem:[#allocation0] sm:$0x1] %vm21_vm3, %v20_v9  }
  0x7b   :  { %28 = vst.msk [vmem:[#allocation0] sm:$0x1] %vm27_vm4, %v26_v11  }
  0x7c   :  { %v32_v12 = vpop.permute.xlu0 %31   ;;  %v38_v13 = vpop.permute.xlu1 %37  }
  0x7d   :  { %34 = vst.msk [vmem:[#allocation0] sm:$0x1] %vm33_vm5, %v32_v12  }
  0x7e   :  { %40 = vst.msk [vmem:[#allocation0] sm:$0x1] %vm39_vm6, %v38_v13  }
  0x80   :  { %v44_v14 = vpop.permute.xlu0 %43  }
  0x81   :  { %46 = vst.msk [vmem:[#allocation0] sm:$0x1] %vm45_vm7, %v44_v14  }
  0x88   :  { %v50_v15 = vld [vmem:[#allocation0] sm:$0x1] }
  0x89   :  { %52 = vst [vmem:[%s112_s1] sm:$0x1] %v50_v15 }

// kernel: fullcnn_forward.1
= control target key start
LH: loop header
LB: loop body
LE: loop exit
PB: predicated region body
PF: predicated region fallthrough
CT: control target
= control target key end

     0   :  { %s1650_s0 = inlined_call_operand.vmem [shape: f32[4,800], index: 0, kind: input, shape index: {}]   ;;  %s1651_s1 = inlined_call_operand.vmem [shape: f32[800,32], index: 1, kind: input, shape index: {}]   ;;  %s1652_s2 = inlined_call_operand.vmem [shape: f32[1,32], index: 2, kind: input, shape index: {}]   ;;  %s1653_s3 = inlined_call_operand.vmem [shape: f32[32,128], index: 3, kind: input, shape index: {}]   ;;  %s1654_s4 = inlined_call_operand.vmem [shape: f32[1,128], index: 4, kind: input, shape index: {}]   ;;  %s1655_s5 = inlined_call_operand.vmem [shape: f32[128,64], index: 5, kind: input, shape index: {}]   ;;  %s1656_s6 = inlined_call_operand.vmem [shape: f32[1,64], index: 6, kind: input, shape index: {}]   ;;  %s1657_s7 = inlined_call_operand.vmem [shape: f32[64,3], index: 7, kind: input, shape index: {}]   ;;  %s1658_s8 = inlined_call_operand.vmem [shape: f32[1,3], index: 8, kind: input, shape index: {}]   ;;  %s1659_s9 = inlined_call_operand.hbm [shape: f32[2,3], index: 9, kind: output, shape index: {}]  }
   0x1   :  { %v53_v0 = vld [vmem:[%s1651_s1 + $0x80] sm:$0xff]  ;;  %v54_v1 = vld [vmem:[%s1651_s1 + $0x88] sm:$0xff]  ;;  %v55_v11 = vld [vmem:[%s1651_s1 + $0x90] sm:$0xff] }
   0x2   :  { %v85_v2 = vld [vmem:[%s1651_s1 + $0x180] sm:$0xff]  ;;  %v963_v3 = vpack.c.bf16 %v54_v1, %v53_v0  ;;  %v86_v4 = vld [vmem:[%s1651_s1 + $0x188] sm:$0xff]  ;;  %v56_v13 = vld [vmem:[%s1651_s1 + $0x98] sm:$0xff] }
   0x3   :  { %v37_v5 = vld [vmem:[%s1651_s1] sm:$0xff]  ;;  %v38_v6 = vld [vmem:[%s1651_s1 + $0x8] sm:$0xff]  ;;  %v995_v7 = vpack.c.bf16 %v86_v4, %v85_v2  ;;  %v87_v14 = vld [vmem:[%s1651_s1 + $0x190] sm:$0xff]  ;;  %v967_v16 = vpack.c.bf16 %v56_v13, %v55_v11 }
   0x4   :  { %v965_v8 = vpack.c.bf16 %v38_v6, %v37_v5  ;;  %v69_v9 = vld [vmem:[%s1651_s1 + $0x100] sm:$0xff]  ;;  %v70_v10 = vld [vmem:[%s1651_s1 + $0x108] sm:$0xff]  ;;  %964 = vmatprep.subr.bf16.mxu0 %v963_v3  ;;  %v88_v15 = vld [vmem:[%s1651_s1 + $0x198] sm:$0xff] }
   0x5   :  { %v997_v12 = vpack.c.bf16 %v70_v10, %v69_v9  ;;  %996 = vmatprep.subr.bf16.mxu1 %v995_v7  ;;  %v999_v17 = vpack.c.bf16 %v88_v15, %v87_v14  ;;  %v39_v18 = vld [vmem:[%s1651_s1 + $0x10] sm:$0xff]  ;;  %v40_v19 = vld [vmem:[%s1651_s1 + $0x18] sm:$0xff]  ;;  %v57_v23 = vld [vmem:[%s1651_s1 + $0xa0] sm:$0xff] }
   0x6   :  { %966 = vmatpush3.bf16.msra.mxu0 %v965_v8  ;;  %v71_v20 = vld [vmem:[%s1651_s1 + $0x110] sm:$0xff]  ;;  %v969_v21 = vpack.c.bf16 %v40_v19, %v39_v18  ;;  %v72_v22 = vld [vmem:[%s1651_s1 + $0x118] sm:$0xff]  ;;  %v58_v24 = vld [vmem:[%s1651_s1 + $0xa8] sm:$0xff] }
   0x7   :  { %998 = vmatpush3.bf16.msra.mxu1 %v997_v12  ;;  %968 = vmatprep.subr.bf16.mxu0 %v967_v16  ;;  %v1001_v25 = vpack.c.bf16 %v72_v22, %v71_v20  ;;  %v971_v26 = vpack.c.bf16 %v58_v24, %v57_v23  ;;  %v89_v27 = vld [vmem:[%s1651_s1 + $0x1a0] sm:$0xff]  ;;  %v90_v28 = vld [vmem:[%s1651_s1 + $0x1a8] sm:$0xff]  ;;  %v59_v35 = vld [vmem:[%s1651_s1 + $0xb0] sm:$0xff] }
   0x8   :  { %1000 = vmatprep.subr.bf16.mxu1 %v999_v17  ;;  %v41_v29 = vld [vmem:[%s1651_s1 + $0x20] sm:$0xff]  ;;  %v1003_v30 = vpack.c.bf16 %v90_v28, %v89_v27  ;;  %v42_v31 = vld [vmem:[%s1651_s1 + $0x28] sm:$0xff]  ;;  %v60_v36 = vld [vmem:[%s1651_s1 + $0xb8] sm:$0xff] }
   0x9   :  { %v73_v32 = vld [vmem:[%s1651_s1 + $0x120] sm:$0xff]  ;;  %v74_v33 = vld [vmem:[%s1651_s1 + $0x128] sm:$0xff]  ;;  %v973_v34 = vpack.c.bf16 %v42_v31, %v41_v29  ;;  %v91_v37 = vld [vmem:[%s1651_s1 + $0x1b0] sm:$0xff]  ;;  %v975_v39 = vpack.c.bf16 %v60_v36, %v59_v35 }
   0xa   :  { %970 = vmatpush3.bf16.msra.mxu0 %v969_v21  ;;  %v1005_v38 = vpack.c.bf16 %v74_v33, %v73_v32  ;;  %v92_v40 = vld [vmem:[%s1651_s1 + $0x1b8] sm:$0xff]  ;;  %v43_v41 = vld [vmem:[%s1651_s1 + $0x30] sm:$0xff]  ;;  %v61_v46 = vld [vmem:[%s1651_s1 + $0xc0] sm:$0xff] }
   0xb   :  { %1002 = vmatpush3.bf16.msra.mxu1 %v1001_v25  ;;  %972 = vmatprep.subr.bf16.mxu0 %v971_v26  ;;  %v44_v42 = vld [vmem:[%s1651_s1 + $0x38] sm:$0xff]  ;;  %v1007_v43 = vpack.c.bf16 %v92_v40, %v91_v37  ;;  %v75_v44 = vld [vmem:[%s1651_s1 + $0x130] sm:$0xff]  ;;  %v62_v47 = vld [vmem:[%s1651_s1 + $0xc8] sm:$0xff] }
   0xc   :  { %1004 = vmatprep.subr.bf16.mxu1 %v1003_v30  ;;  %v76_v45 = vld [vmem:[%s1651_s1 + $0x138] sm:$0xff]  ;;  %v93_v48 = vld [vmem:[%s1651_s1 + $0x1c0] sm:$0xff]  ;;  %v94_v49 = vld [vmem:[%s1651_s1 + $0x1c8] sm:$0xff]  ;;  %v977_v50 = vpack.c.bf16 %v44_v42, %v43_v41  ;;  %v979_v52 = vpack.c.bf16 %v62_v47, %v61_v46 }
   0xd   :  { %v1009_v51 = vpack.c.bf16 %v76_v45, %v75_v44  ;;  %v45_v53 = vld [vmem:[%s1651_s1 + $0x40] sm:$0xff]  ;;  %v46_v54 = vld [vmem:[%s1651_s1 + $0x48] sm:$0xff]  ;;  %v1011_v56 = vpack.c.bf16 %v94_v49, %v93_v48  ;;  %v63_v58 = vld [vmem:[%s1651_s1 + $0xd0] sm:$0xff] }
   0xe   :  { %974 = vmatpush3.bf16.msra.mxu0 %v973_v34  ;;  %v77_v55 = vld [vmem:[%s1651_s1 + $0x140] sm:$0xff]  ;;  %v78_v57 = vld [vmem:[%s1651_s1 + $0x148] sm:$0xff]  ;;  %v64_v59 = vld [vmem:[%s1651_s1 + $0xd8] sm:$0xff]  ;;  %v981_v62 = vpack.c.bf16 %v46_v54, %v45_v53 }
   0xf   :  { %1006 = vmatpush3.bf16.msra.mxu1 %v1005_v38  ;;  %976 = vmatprep.subr.bf16.mxu0 %v975_v39  ;;  %v95_v60 = vld [vmem:[%s1651_s1 + $0x1d0] sm:$0xff]  ;;  %v96_v61 = vld [vmem:[%s1651_s1 + $0x1d8] sm:$0xff]  ;;  %v1013_v63 = vpack.c.bf16 %v78_v57, %v77_v55  ;;  %v983_v0 = vpack.c.bf16 %v64_v59, %v63_v58  ;;  %v65_v6 = vld [vmem:[%s1651_s1 + $0xe0] sm:$0xff] }
  0x10   :  { %1008 = vmatprep.subr.bf16.mxu1 %v1007_v43  ;;  %v47_v1 = vld [vmem:[%s1651_s1 + $0x50] sm:$0xff]  ;;  %v48_v2 = vld [vmem:[%s1651_s1 + $0x58] sm:$0xff]  ;;  %v1015_v4 = vpack.c.bf16 %v96_v61, %v95_v60  ;;  %v66_v7 = vld [vmem:[%s1651_s1 + $0xe8] sm:$0xff] }
  0x11   :  { %v79_v3 = vld [vmem:[%s1651_s1 + $0x150] sm:$0xff]  ;;  %v80_v5 = vld [vmem:[%s1651_s1 + $0x158] sm:$0xff]  ;;  %v97_v8 = vld [vmem:[%s1651_s1 + $0x1e0] sm:$0xff]  ;;  %v985_v10 = vpack.c.bf16 %v48_v2, %v47_v1  ;;  %v987_v14 = vpack.c.bf16 %v66_v7, %v65_v6 }
  0x12   :  { %978 = vmatpush3.bf16.msra.mxu0 %v977_v50  ;;  %v98_v9 = vld [vmem:[%s1651_s1 + $0x1e8] sm:$0xff]  ;;  %v49_v11 = vld [vmem:[%s1651_s1 + $0x60] sm:$0xff]  ;;  %v1017_v13 = vpack.c.bf16 %v80_v5, %v79_v3  ;;  %v67_v20 = vld [vmem:[%s1651_s1 + $0xf0] sm:$0xff] }
  0x13   :  { %1010 = vmatpush3.bf16.msra.mxu1 %v1009_v51  ;;  %980 = vmatprep.subr.bf16.mxu0 %v979_v52  ;;  %v50_v12 = vld [vmem:[%s1651_s1 + $0x68] sm:$0xff]  ;;  %v81_v15 = vld [vmem:[%s1651_s1 + $0x160] sm:$0xff]  ;;  %v1019_v18 = vpack.c.bf16 %v98_v9, %v97_v8  ;;  %v68_v21 = vld [vmem:[%s1651_s1 + $0xf8] sm:$0xff]  ;;  %v1142_v52 = vmov 0.0|0.0  }
  0x14   :  { %1012 = vmatprep.subr.bf16.mxu1 %v1011_v56  ;;  %v33_v16 = vld [vmem:[%s1650_s0] sm:$0xff]  ;;  %v34_v17 = vld [vmem:[%s1650_s0 + $0x8] sm:$0xff]  ;;  %v99_v24 = vld [vmem:[%s1651_s1 + $0x1f0] sm:$0xff]  ;;  %v989_v26 = vpack.c.bf16 %v50_v12, %v49_v11  ;;  %v991_v28 = vpack.c.bf16 %v68_v21, %v67_v20 }
  0x15   :  { %v82_v19 = vld [vmem:[%s1651_s1 + $0x168] sm:$0xff]  ;;  %v141_v22 = vcombine.high %v33_v16, %v33_v16  ;;  %v142_v23 = vcombine.high %v34_v17, %v34_v17  ;;  %v100_v25 = vld [vmem:[%s1651_s1 + $0x1f8] sm:$0xff]  ;;  %v51_v29 = vld [vmem:[%s1651_s1 + $0x70] sm:$0xff] }
  0x16   :  { %982 = vmatpush3.bf16.msra.mxu0 %v981_v62  ;;  %v1021_v27 = vpack.c.bf16 %v82_v19, %v81_v15  ;;  %v52_v30 = vld [vmem:[%s1651_s1 + $0x78] sm:$0xff]  ;;  %v83_v31 = vld [vmem:[%s1651_s1 + $0x170] sm:$0xff]  ;;  %v1023_v32 = vpack.c.bf16 %v100_v25, %v99_v24  ;;  %v117_v34 = vld [vmem:[%s1651_s1 + $0x280] sm:$0xff] }
  0x17   :  { %1014 = vmatpush3.bf16.msra.mxu1 %v1013_v63  ;;  %984 = vmatprep.subr.bf16.mxu0 %v983_v0  ;;  %v84_v33 = vld [vmem:[%s1651_s1 + $0x178] sm:$0xff]  ;;  %v118_v35 = vld [vmem:[%s1651_s1 + $0x288] sm:$0xff]  ;;  %v993_v36 = vpack.c.bf16 %v52_v30, %v51_v29  ;;  %v101_v39 = vld [vmem:[%s1651_s1 + $0x200] sm:$0xff] }
  0x18   :  { %1016 = vmatprep.subr.bf16.mxu1 %v1015_v4  ;;  %214 = vmatprep.mubr.f32.mxu0 %v141_v22  ;;  %v1025_v37 = vpack.c.bf16 %v84_v33, %v83_v31  ;;  %v1027_v38 = vpack.c.bf16 %v118_v35, %v117_v34  ;;  %v102_v40 = vld [vmem:[%s1651_s1 + $0x208] sm:$0xff]  ;;  %v119_v41 = vld [vmem:[%s1651_s1 + $0x290] sm:$0xff]  ;;  %v120_v42 = vld [vmem:[%s1651_s1 + $0x298] sm:$0xff] }
  0x19   :  { %284 = vmatprep.mubr.f32.mxu1 %v142_v23  ;;  %v103_v43 = vld [vmem:[%s1651_s1 + $0x210] sm:$0xff]  ;;  %v1029_v44 = vpack.c.bf16 %v102_v40, %v101_v39  ;;  %v104_v45 = vld [vmem:[%s1651_s1 + $0x218] sm:$0xff]  ;;  %v121_v46 = vld [vmem:[%s1651_s1 + $0x2a0] sm:$0xff]  ;;  %v1031_v48 = vpack.c.bf16 %v120_v42, %v119_v41 }
  0x1a   :  { %986 = vmatpush3.bf16.msra.mxu0 %v985_v10  ;;  %v133_v47 = vld [vmem:[%s1651_s1 + $0x300] sm:$0xff]  ;;  %v122_v49 = vld [vmem:[%s1651_s1 + $0x2a8] sm:$0xff]  ;;  %v1433_v51 = vld [vmem:[%s1650_s0 + $0x10] sm:$0xff] }
  0x1b   :  { %1018 = vmatpush3.bf16.msra.mxu1 %v1017_v13  ;;  %988 = vmatprep.subr.bf16.mxu0 %v987_v14  ;;  %v134_v50 = vld [vmem:[%s1651_s1 + $0x308] sm:$0xff]  ;;  %v143_v54 = vcombine.high %v1433_v51, %v1433_v51  ;;  %v135_v55 = vld [vmem:[%s1651_s1 + $0x310] sm:$0xff]  ;;  %v136_v56 = vld [vmem:[%s1651_s1 + $0x318] sm:$0xff] }
  0x1c   :  { %1020 = vmatprep.subr.bf16.mxu1 %v1019_v18  ;;  %v1060_v53 = vpack.c.bf16 %v134_v50, %v133_v47 }
  0x1e   :  { %990 = vmatpush3.bf16.msra.mxu0 %v989_v26 }
  0x1f   :  { %1022 = vmatpush3.bf16.msra.mxu1 %v1021_v27  ;;  %992 = vmatprep.subr.bf16.mxu0 %v991_v28 }
  0x20   :  { %1024 = vmatprep.subr.bf16.mxu1 %v1023_v32 }
  0x22   :  { %994 = vmatpush3.bf16.msra.mxu0 %v993_v36 }
  0x23   :  { %1026 = vmatpush3.bf16.msra.mxu1 %v1025_v37  ;;  %1028 = vmatprep.subr.bf16.mxu0 %v1027_v38 }
  0x24   :  { %1059 = vmatprep.subr.bf16.mxu1 %v1142_v52 }
  0x25   :  { %14 = vsyncpa [#allocation3], 0  ;;  %215 = vmatmul.mubr.f32.vlgmr.msra.gmra.mrb[0].mxu0 %v33_v16  ;;  %v1033_v57 = vpack.c.bf16 %v104_v45, %v103_v43  ;;  %v1035_v58 = vpack.c.bf16 %v122_v49, %v121_v46  ;;  %v105_v59 = vld [vmem:[%s1651_s1 + $0x220] sm:$0xff]  ;;  %v106_v60 = vld [vmem:[%s1651_s1 + $0x228] sm:$0xff]  ;;  %v1063_v61 = vpack.c.bf16 %v136_v56, %v135_v55  ;;  %vm1143_vm0 = vmmov 0  }
  0x26   :  { %285 = vmatmul.mubr.f32.vlgmr.msra.gmra.mrb[0].mxu1 %v34_v17  ;;  %1030 = vmatpush3.bf16.msra.mxu0 %v1029_v44  ;;  %v123_v62 = vld [vmem:[%s1651_s1 + $0x2b0] sm:$0xff]  ;;  %v124_v63 = vld [vmem:[%s1651_s1 + $0x2b8] sm:$0xff]  ;;  %v1144_v0 = vmov 0.0   ;;  %v1037_v1 = vpack.c.bf16 %v106_v60, %v105_v59  ;;  %vm147_vm1 = vcmask 261120   ;;  %v125_v6 = vld [vmem:[%s1651_s1 + $0x2c0] sm:$0xff]  ;;  %vm637_vm2 = vcmask 523264  }
  0x27   :  { %1032 = vmatprep.subr.bf16.mxu0 %v1031_v48  ;;  %1061 = vmatpush3.bf16.msra.mxu1 %v1060_v53  ;;  %v1039_v2 = vpack.c.bf16 %v124_v63, %v123_v62  ;;  %v107_v3 = vld [vmem:[%s1651_s1 + $0x230] sm:$0xff]  ;;  %v108_v4 = vld [vmem:[%s1651_s1 + $0x238] sm:$0xff]  ;;  %v126_v7 = vld [vmem:[%s1651_s1 + $0x2c8] sm:$0xff]  ;;  %vm711_vm3 = vcmask 17408  }
  0x28   :  { %354 = vmatprep.mubr.f32.mxu0 %v143_v54  ;;  %1062 = vmatprep.subr.bf16.mxu1 %v1142_v52  ;;  %v36_v5 = vld [vmem:[%s1650_s0 + $0x18] sm:$0xf]  ;;  %v1041_v8 = vpack.c.bf16 %v108_v4, %v107_v3  ;;  %v1043_v9 = vpack.c.bf16 %v126_v7, %v125_v6  ;;  %v109_v10 = vld [vmem:[%s1651_s1 + $0x240] sm:$0xff]  ;;  %v110_v11 = vld [vmem:[%s1651_s1 + $0x248] sm:$0xff] }
  0x29   :  { %895 = vmatprep.mubr.msk.f32.mxu1 %vm1143_vm0, %v1144_v0  ;;  %v127_v12 = vld [vmem:[%s1651_s1 + $0x2d0] sm:$0xff]  ;;  %v128_v13 = vld [vmem:[%s1651_s1 + $0x2d8] sm:$0xff]  ;;  %v1045_v14 = vpack.c.bf16 %v110_v11, %v109_v10  ;;  %v129_v18 = vld [vmem:[%s1651_s1 + $0x2e0] sm:$0xff] }
  0x2a   :  { %1034 = vmatpush3.bf16.msra.mxu0 %v1033_v57  ;;  %v1047_v15 = vpack.c.bf16 %v128_v13, %v127_v12  ;;  %v111_v16 = vld [vmem:[%s1651_s1 + $0x250] sm:$0xff]  ;;  %v112_v17 = vld [vmem:[%s1651_s1 + $0x258] sm:$0xff]  ;;  %v130_v19 = vld [vmem:[%s1651_s1 + $0x2e8] sm:$0xff] }
  0x2b   :  { %1036 = vmatprep.subr.bf16.mxu0 %v1035_v58  ;;  %1064 = vmatpush3.bf16.msra.mxu1 %v1063_v61  ;;  %v1049_v20 = vpack.c.bf16 %v112_v17, %v111_v16  ;;  %v1051_v21 = vpack.c.bf16 %v130_v19, %v129_v18  ;;  %v113_v22 = vld [vmem:[%s1651_s1 + $0x260] sm:$0xff]  ;;  %v114_v23 = vld [vmem:[%s1651_s1 + $0x268] sm:$0xff]  ;;  %v131_v24 = vld [vmem:[%s1651_s1 + $0x2f0] sm:$0xff] }
  0x2c   :  { %1065 = vmatprep.subr.bf16.mxu1 %v1142_v52  ;;  %v132_v25 = vld [vmem:[%s1651_s1 + $0x2f8] sm:$0xff]  ;;  %v1053_v26 = vpack.c.bf16 %v114_v23, %v113_v22  ;;  %v115_v28 = vld [vmem:[%s1651_s1 + $0x270] sm:$0xff]  ;;  %v443_v31 = vld [vmem:[%s1653_s3] sm:$0xff] }
  0x2d   :  { %v1055_v27 = vpack.c.bf16 %v132_v25, %v131_v24  ;;  %v116_v29 = vld [vmem:[%s1651_s1 + $0x278] sm:$0xff]  ;;  %v444_v32 = vld [vmem:[%s1653_s3 + $0x8] sm:$0xff]  ;;  %v445_v34 = vld [vmem:[%s1653_s3 + $0x10] sm:$0xff] }
  0x2e   :  { %1038 = vmatpush3.bf16.msra.mxu0 %v1037_v1  ;;  %896 = vmatmul.mubr.msk.f32.vlgmr.msra.gmra.mrb[2].mxu1 %vm147_vm1, %v36_v5  ;;  %v1057_v30 = vpack.c.bf16 %v116_v29, %v115_v28  ;;  %v1066_v33 = vpack.c.bf16 %v444_v32, %v443_v31  ;;  %v446_v35 = vld [vmem:[%s1653_s3 + $0x18] sm:$0xff]  ;;  %v740_v53 = vld [vmem:[%s1652_s2] ss:$0 sm:$0xff]  ;;  %v529_v56 = vld [vmem:[%s1655_s5 + $0x8] sm:$0xff] }
  0x2f   :  { %1040 = vmatprep.subr.bf16.mxu0 %v1039_v2  ;;  %906 = vmatprep.mubr.msk.f32.mxu1 %vm1143_vm0, %v1144_v0  ;;  %v1069_v36 = vpack.c.bf16 %v446_v35, %v445_v34  ;;  %v528_v55 = vld [vmem:[%s1655_s5] sm:$0xff]  ;;  %v530_v60 = vld [vmem:[%s1655_s5 + $0x10] sm:$0xff]  ;;  %v531_v61 = vld [vmem:[%s1655_s5 + $0x18] sm:$0xff] }
  0x30   :  { %1067 = vmatpush3.bf16.msra.mxu1 %v1066_v33  ;;  %v1072_v58 = vpack.c.bf16 %v529_v56, %v528_v55  ;;  %v1075_v62 = vpack.c.bf16 %v531_v61, %v530_v60  ;;  %v532_v63 = vld [vmem:[%s1655_s5 + $0x20] sm:$0xff]  ;;  %v533_v1 = vld [vmem:[%s1655_s5 + $0x28] sm:$0xff]  ;;  %v534_v3 = vld [vmem:[%s1655_s5 + $0x30] sm:$0xff] }
  0x31   :  { %1068 = vmatprep.subr.bf16.mxu1 %v1142_v52  ;;  %v1078_v2 = vpack.c.bf16 %v533_v1, %v532_v63  ;;  %v536_v5 = vld [vmem:[%s1655_s5 + $0x40] sm:$0xff]  ;;  %v537_v6 = vld [vmem:[%s1655_s5 + $0x48] sm:$0xff]  ;;  %v624_v19 = vld [vmem:[%s1657_s7 + $0x10] sm:$0xff] }
  0x32   :  { %1042 = vmatpush3.bf16.msra.mxu0 %v1041_v8  ;;  %v1084_v7 = vpack.c.bf16 %v537_v6, %v536_v5  ;;  %v538_v8 = vld [vmem:[%s1655_s5 + $0x50] sm:$0xff]  ;;  %v540_v11 = vld [vmem:[%s1655_s5 + $0x60] sm:$0xff]  ;;  %v541_v12 = vld [vmem:[%s1655_s5 + $0x68] sm:$0xff] }
  0x33   :  { %1044 = vmatprep.subr.bf16.mxu0 %v1043_v9  ;;  %v539_v9 = vld [vmem:[%s1655_s5 + $0x58] sm:$0xff]  ;;  %v1090_v13 = vpack.c.bf16 %v541_v12, %v540_v11  ;;  %v622_v17 = vld [vmem:[%s1657_s7] sm:$0xff]  ;;  %v623_v18 = vld [vmem:[%s1657_s7 + $0x8] sm:$0xff] }
  0x34   :  { %1070 = vmatpush3.bf16.msra.mxu1 %v1069_v36  ;;  %v1087_v10 = vpack.c.bf16 %v539_v9, %v538_v8  ;;  %v626_v23 = vld [vmem:[%s1657_s7 + $0x20] sm:$0xff]  ;;  %v627_v24 = vld [vmem:[%s1657_s7 + $0x28] sm:$0xff]  ;;  %v628_v31 = vld [vmem:[%s1657_s7 + $0x30] sm:$0xff] }
  0x35   :  { %1071 = vmatprep.subr.bf16.mxu1 %v1142_v52  ;;  %v1102_v25 = vpack.c.bf16 %v627_v24, %v626_v23  ;;  %v629_v32 = vld [vmem:[%s1657_s7 + $0x38] sm:$0xff] }
  0x36   :  { %1046 = vmatpush3.bf16.msra.mxu0 %v1045_v14  ;;  %v542_v14 = vld [vmem:[%s1655_s5 + $0x70] sm:$0xff]  ;;  %v1105_v33 = vpack.c.bf16 %v629_v32, %v628_v31 }
  0x37   :  { %1048 = vmatprep.subr.bf16.mxu0 %v1047_v15  ;;  %v543_v15 = vld [vmem:[%s1655_s5 + $0x78] sm:$0xff] }
  0x38   :  { %v1093_v16 = vpack.c.bf16 %v543_v15, %v542_v14 }
  0x3a   :  { %1050 = vmatpush3.bf16.msra.mxu0 %v1049_v20  ;;  %v1096_v20 = vpack.c.bf16 %v623_v18, %v622_v17 }
  0x3b   :  { %1052 = vmatprep.subr.bf16.mxu0 %v1051_v21  ;;  %v625_v21 = vld [vmem:[%s1657_s7 + $0x18] sm:$0xff] }
  0x3c   :  { %v1099_v22 = vpack.c.bf16 %v625_v21, %v624_v19 }
  0x3e   :  { %1054 = vmatpush3.bf16.msra.mxu0 %v1053_v26  ;;  %v741_v26 = vld [vmem:[%s1654_s4] ss:$0 sm:$0xff] }
  0x3f   :  { %1056 = vmatprep.subr.bf16.mxu0 %v1055_v27 }
  0x42   :  { %1058 = vmatpush3.bf16.msra.mxu0 %v1057_v30 }
  0x43   :  { %1095 = vmatprep.subr.bf16.mxu0 %v1142_v52 }
  0x45   :  { %355 = vmatmul.mubr.f32.vlgmr.msra.gmra.mrb[2].mxu0 %v1433_v51 }
  0x46   :  { %960 = vmatprep.mubr.msk.f32.mxu0 %vm1143_vm0, %v1144_v0  ;;  %1097 = vmatpush3.bf16.msra.mxu0 %v1096_v20 }
  0x47   :  { %1098 = vmatprep.subr.bf16.mxu0 %v1142_v52 }
  0x4a   :  { %1100 = vmatpush3.bf16.msra.mxu0 %v1099_v22 }
  0x4b   :  { %1101 = vmatprep.subr.bf16.mxu0 %v1142_v52 }
  0x4e   :  { %1103 = vmatpush3.bf16.msra.mxu0 %v1102_v25 }
  0x4f   :  { %1104 = vmatprep.subr.bf16.mxu0 %v1142_v52 }
  0x52   :  { %1106 = vmatpush3.bf16.msra.mxu0 %v1105_v33 }
  0xf8   :  { %v778_v37 = vpop.f32.mrb[0].mxu0 }
  0xf9   :  { %v813_v38 = vpop.f32.mrb[0].mxu1  ;;  %v779_v39 = vpop.f32.mrb[1].mxu0 }
  0xfa   :  { %v780_v40 = vadd.f32 %v779_v39, %v778_v37  ;;  %v814_v41 = vpop.f32.mrb[1].mxu1 }
  0xfb   :  { %v815_v42 = vadd.f32 %v814_v41, %v813_v38  ;;  %v744_v38 = vld [vmem:[%s1658_s8] ss:$0 sm:$0xff] }
  0xfd   :  { %v287_v43 = vadd.f32 %v815_v42, %v780_v40 }
 0x101   :  { %v426_v44 = vpop.f32.mrb[2].mxu1 }
 0x102   :  { %v897_v45 = vpop.f32.mrb[3].mxu1 }
 0x118   :  { %v848_v46 = vpop.f32.mrb[2].mxu0 }
 0x119   :  { %v849_v47 = vpop.f32.mrb[3].mxu0 }
 0x11a   :  { %v850_v48 = vadd.f32 %v849_v47, %v848_v46 }
 0x11c   :  { %v357_v49 = vadd.f32 %v850_v48, %v287_v43 }
 0x11e   :  { %v427_v50 = vadd.f32 %v426_v44, %v357_v49 }
 0x120   :  { %v431_v51 = vrot.slane %v427_v50, 2 }
 0x122   :  { %v433_v54 = vmax.f32 %v427_v50, %v431_v51 }
 0x124   :  { %v441_v57 = vadd.f32 %v740_v53, %v433_v54 }
 0x126   :  { %v442_v59 = vmax.f32 %v441_v57, 0.0 }
 0x128   :  { %907 = vmatmul.mubr.msk.f32.vlgmr.msra.gmra.mrb[4].mxu1 %vm147_vm1, %v442_v59 }
 0x129   :  { %1073 = vmatpush3.bf16.msra.mxu1 %v1072_v58  ;;  %941 = vmatprep.mubr.msk.f32.mxu1 %vm1143_vm0, %v1144_v0  ;;  %v535_v0 = vld [vmem:[%s1655_s5 + $0x38] sm:$0xff] }
 0x12a   :  { %1074 = vmatprep.subr.bf16.mxu1 %v1142_v52  ;;  %v1081_v4 = vpack.c.bf16 %v535_v0, %v534_v3 }
 0x12d   :  { %1076 = vmatpush3.bf16.msra.mxu1 %v1075_v62 }
 0x12e   :  { %1077 = vmatprep.subr.bf16.mxu1 %v1142_v52 }
 0x131   :  { %1079 = vmatpush3.bf16.msra.mxu1 %v1078_v2 }
 0x132   :  { %1080 = vmatprep.subr.bf16.mxu1 %v1142_v52 }
 0x135   :  { %1082 = vmatpush3.bf16.msra.mxu1 %v1081_v4 }
 0x136   :  { %1083 = vmatprep.subr.bf16.mxu1 %v1142_v52 }
 0x139   :  { %1085 = vmatpush3.bf16.msra.mxu1 %v1084_v7 }
 0x13a   :  { %1086 = vmatprep.subr.bf16.mxu1 %v1142_v52 }
 0x13d   :  { %1088 = vmatpush3.bf16.msra.mxu1 %v1087_v10 }
 0x13e   :  { %1089 = vmatprep.subr.bf16.mxu1 %v1142_v52 }
 0x141   :  { %1091 = vmatpush3.bf16.msra.mxu1 %v1090_v13 }
 0x142   :  { %1092 = vmatprep.subr.bf16.mxu1 %v1142_v52  ;;  %v743_v52 = vld [vmem:[%s1656_s6] ss:$0 sm:$0xff]  ;;  %s1145_s6 = smov [#allocation2]  }
 0x143   :  { %s731_s7 = sshll.u32 %s1145_s6, 4  ;;  %s732_s7 = int_to_ptr.vmem [resolvable:$true] %s731_s7 }
 0x144   :  { %s1118_s8 = scalar_lea.vmem %s732_s7, 32  ;;  %p1123_p1 = scmp.lt.s32.totalorder %s732_s7, %s732_s7 }
 0x145   :  { %1094 = vmatpush3.bf16.msra.mxu1 %v1093_v16  ;;  %p1119_p0 = scmp.ne.s32.totalorder %s732_s7, %s1118_s8  ;;  %p1124_p2 = scmp.lt.s32.totalorder %s1118_s8, %s1118_s8 }
 0x147   :  { %p1125_p3 = por %p1124_p2, %p1123_p1 }
 0x149   :  { %p1126_p4 = pnand %p1125_p3, %p1119_p0 }
 0x1fb   :  { %v523_v27 = vpop.f32.mrb[4].mxu1 }
 0x1fc   :  { %v524_v28 = vadd.f32 %v741_v26, %v523_v27  ;;  %v908_v29 = vpop.f32.mrb[5].mxu1 }
 0x1fe   :  { %v527_v30 = vmax.f32 %v524_v28, 0.0 }
 0x200   :  { %942 = vmatmul.mubr.f32.vlgmr.msra.gmra.mrb[6].mxu1 %v527_v30 }
 0x2d3   :  { %v617_v34 = vpop.f32.mrb[6].mxu1 }
 0x2d4   :  { %v618_v35 = vadd.f32 %v743_v52, %v617_v34  ;;  %v943_v36 = vpop.f32.mrb[7].mxu1 }
 0x2d6   :  { %v621_v37 = vmax.f32 %v618_v35, 0.0 }
 0x2d8   :  { %961 = vmatmul.mubr.msk.f32.vlgmr.msra.gmra.mrb[4].mxu0 %vm637_vm2, %v621_v37 }
 0x3ab   :  { %v707_v39 = vpop.f32.mrb[4].mxu0 }
 0x3ac   :  { %v708_v40 = vadd.f32 %v744_v38, %v707_v39  ;;  %v962_v41 = vpop.f32.mrb[5].mxu0 }
 0x3ae   :  { %v712_v42 = vsel %vm711_vm3, %v708_v40, -inf }
 0x3af   :  { %713 = vmax.xlane.f32.xlu0 %v712_v42 }
 0x43c   :  { %v714_v43 = vpop.xlane.xlu0 %713 }
 0x43d   :  { %v715_v44 = vsub.f32 %v708_v40, %v714_v43 }
 0x43f   :  { %v716_v45 = vmul.f32 1.442695, %v715_v44 }
 0x441   :  { %1114 = vpow2.f32 %v716_v45 }
 0x44b   :  { %v1115_v46 = vpop.eup %1114 }
 0x44c   :  { %v718_v47 = vsel %vm711_vm3, %v1115_v46, 0.0 }
 0x44d   :  { %719 = vadd.xlane.f32.xlu0 %v718_v47 }
 0x4da   :  { %v720_v48 = vpop.xlane.xlu0 %719 }
 0x4db   :  { %1116 = vlog2.f32 %v720_v48 }
 0x4e5   :  { %v1117_v49 = vpop.eup %1116 }
 0x4e6   :  { %v722_v50 = vmul.f32 0.6931472, %v1117_v49 }
 0x4e8   :  { %v723_v51 = vsub.f32 %v715_v44, %v722_v50 }
 0x4ea   :  { %724 = vst.msk [vmem:[#allocation2] sm:$0x3] %vm711_vm3, %v723_v51 }
 0x4eb   :  { %1129 = shalt.err (!%p1126_p4)
}
 0x4ec   :  { %s1130_s17 = scalar_lea.hbm %s1659_s9, 32 }
 0x4ed   :  { %p1131_p5 = scmp.ne.s32.totalorder %s1659_s9, %s1130_s17  ;;  %p1134_p6 = scmp.lt.u32.totalorder %s1130_s17, %s1659_s9 }
 0x4ef   :  { %p1136_p7 = pnand %p1134_p6, %p1131_p5 }
 0x4f1   :  { %1139 = shalt.err (!%p1136_p7)
}
 0x4f2   :  { %734 = dma.vmem_to_hbm [thread:$0]  %s732_s7, 32, %s1659_s9, [#allocation3]  }
 0x4f3   :  { %1140 = dma.done.wait [#allocation3], 32  }
 0x4f4   :  { %1141 = vsyncadd [#allocation3], 4294967264 }
 0x4f5   :  { %738 = vsyncpa [#allocation3], 1 }

</bundles_post_ra>
